<compile_context>
chip_gen: v7x
topology: tpu7x:2x2x1
jax: 0.10.0
libtpu: 0.0.40
codegen_flags: <defaults>
</compile_context>

<pallas_src>
import functools

import jax
import jax.numpy as jnp
from jax.experimental import pallas as pl
from jax.experimental.pallas import tpu as pltpu

STATE_DIM = 32   # small "state_dim" (reference default is 256)
N_ADJ = 6        # circular polygon adjacency: +/-1, +/-2, +/-3


# -----------------------------------------------------------------------------
# Pallas kernel: whole (3 polygon sets x batch) problem as one resident block.
# -----------------------------------------------------------------------------
def polygnn_kernel(feat_ref, poly_ref, adj_ref,
                   w_in_ref, b_in_ref,
                   w1_ref, b1_ref,
                   w2_ref, b2_ref,
                   w_pred_ref, b_pred_ref,
                   out_ref):
    """PolyGNN forward, feature-major layout.

    feat_ref : [Din, M]  sampled features + coords (node axis M on lanes)
    poly_ref : [2,   M]  initial polygon coords in [0, 1]
    adj_ref  : [M,   M]  block-diagonal symmetric ring-averaging matrix
    out_ref  : [2,   M]  refined polygon coords (lane-dense store)
    """
    feat = feat_ref[...]
    adj = adj_ref[...]

    # Input projection: [F, Din] x [Din, M] -> [F, M]
    h = jnp.maximum(
        jnp.dot(w_in_ref[...], feat, preferred_element_type=jnp.float32)
        + b_in_ref[...], 0.0)

    # GCN layer 1: ring aggregation is one MXU dot; self/neighbor projections
    # are fused into a single [F, 2F] x [2F, M] dot.
    agg = jnp.dot(h, adj, preferred_element_type=jnp.float32)
    z = jnp.concatenate([h, agg], axis=0)                       # [2F, M]
    h = jnp.maximum(
        jnp.dot(w1_ref[...], z, preferred_element_type=jnp.float32)
        + b1_ref[...], 0.0)

    # GCN layer 2
    agg = jnp.dot(h, adj, preferred_element_type=jnp.float32)
    z = jnp.concatenate([h, agg], axis=0)
    h = jnp.maximum(
        jnp.dot(w2_ref[...], z, preferred_element_type=jnp.float32)
        + b2_ref[...], 0.0)

    # Per-vertex 2D offset prediction + polygon refinement, lane-dense store.
    off = (jnp.dot(w_pred_ref[...], h, preferred_element_type=jnp.float32)
           + b_pred_ref[...])
    out_ref[...] = jnp.clip(poly_ref[...] + off, 0.0, 1.0)


# -----------------------------------------------------------------------------
# JAX glue: sampling, ring matrix, fused jitted forward.
# -----------------------------------------------------------------------------
def _ring_average_matrix(n_vertices, n_adj):
    """Symmetric [P, P] matrix averaging the n_adj nearest ring neighbors."""
    k = n_adj // 2
    idx = jnp.arange(n_vertices)
    d = jnp.abs(idx[:, None] - idx[None, :])
    d = jnp.minimum(d, n_vertices - d)              # circular distance
    nbr = (d >= 1) & (d <= k)
    return nbr.astype(jnp.float32) * (1.0 / float(2 * k))


def _sample_features(x, polys):
    """Nearest-neighbor sample of feature map x (NCHW) at polygon vertices.

    x: [B, C, H, W], polys: [B, P, 2] with (x, y) in [0, 1].
    Returns node features [B, P, C + 2] (sampled features concat coords).
    """
    # TODO(synk): canonical Curve-GCN uses bilinear grid_sample; nearest-neighbor
    # gather is used here (gather has no clean in-kernel Pallas equivalent at
    # these tiny sizes).
    _, _, H, W = x.shape
    px = jnp.clip(jnp.round(polys[..., 0] * (W - 1)).astype(jnp.int32), 0, W - 1)
    py = jnp.clip(jnp.round(polys[..., 1] * (H - 1)).astype(jnp.int32), 0, H - 1)

    def per_batch(xb, pxb, pyb):
        return xb[:, pyb, pxb].T                    # [P, C]

    sampled = jax.vmap(per_batch)(x, px, py)        # [B, P, C]
    return jnp.concatenate([sampled, polys], axis=-1)


@functools.partial(jax.jit, static_argnums=(0,))
def _polygnn_forward(n_adj, x, polys, *params):
    """polys: [S, B, P, 2] (S = number of polygon init sets, here 3)."""
    S, B, P, _ = polys.shape
    M = S * B * P

    # Sample features for all sets at once (stays inside this jit).
    feats = jax.vmap(lambda p: _sample_features(x, p))(polys)   # [S, B, P, Din]
    Din = feats.shape[-1]

    # Feature-major layout: node axis on lanes.
    feat_t = feats.reshape(M, Din).T                            # [Din, M]
    poly_t = polys.reshape(M, 2).T                              # [2,  M]

    # Block-diagonal ring-averaging matrix over all S*B polygons.
    adj = jnp.kron(jnp.eye(S * B, dtype=jnp.float32),
                   _ring_average_matrix(P, n_adj))              # [M, M]

    out_t = pl.pallas_call(
        polygnn_kernel,
        out_shape=jax.ShapeDtypeStruct((2, M), jnp.float32),
        compiler_params=pltpu.CompilerParams(
            vmem_limit_bytes=32 * 1024 * 1024),
    )(feat_t, poly_t, adj, *params)

    return out_t.T.reshape(S, B, P, 2)


class PolyGNN:
    """JAX/Pallas re-implementation of the (stub) PyTorch PolyGNN module."""

    def __init__(self, state_dim=STATE_DIM, n_adj=N_ADJ, in_channels=4,
                 coarse_to_fine_steps=0, get_point_annotation=False, seed=0):
        del coarse_to_fine_steps, get_point_annotation  # unused in stub reference
        self.state_dim = state_dim
        self.n_adj = n_adj
        din = in_channels + 2
        f = state_dim
        key = jax.random.PRNGKey(seed)
        ks = jax.random.split(key, 4)
        s = 0.1
        # Weights stored in feature-major layout; GCN layer weights are the
        # fused [w_self | w_nei] stack of shape [F, 2F].
        self.params = (
            s * jax.random.normal(ks[0], (f, din), jnp.float32),     # w_in
            jnp.zeros((f, 1), jnp.float32),                          # b_in
            s * jax.random.normal(ks[1], (f, 2 * f), jnp.float32),   # w1 = [self|nei]
            jnp.zeros((f, 1), jnp.float32),                          # b1
            s * jax.random.normal(ks[2], (f, 2 * f), jnp.float32),   # w2 = [self|nei]
            jnp.zeros((f, 1), jnp.float32),                          # b2
            s * jax.random.normal(ks[3], (2, f), jnp.float32),       # w_pred
            jnp.zeros((2, 1), jnp.float32),                          # b_pred
        )

    def forward(self, x, init_polys1, init_polys2, init_polys3, num_polys):
        # TODO(synk): reference forward body is `pass` (returns None); num_polys
        # is accepted but unused, matching the stub signature.
        del num_polys
        polys = jnp.stack([init_polys1, init_polys2, init_polys3], axis=0)
        out = _polygnn_forward(self.n_adj, x, polys, *self.params)
        return out[0], out[1], out[2]


if __name__ == "__main__":
    key = jax.random.PRNGKey(0)
    k_x, k1, k2, k3 = jax.random.split(key, 4)

    B, C, H, W = 2, 4, 16, 16
    P = 16  # vertices per polygon

    x = jax.random.normal(k_x, (B, C, H, W), jnp.float32)
    init_polys1 = jax.random.uniform(k1, (B, P, 2), jnp.float32)
    init_polys2 = jax.random.uniform(k2, (B, P, 2), jnp.float32)
    init_polys3 = jax.random.uniform(k3, (B, P, 2), jnp.float32)
    num_polys = jnp.array([1, 1], jnp.int32)

    model = PolyGNN(state_dim=STATE_DIM, n_adj=N_ADJ, in_channels=C)
    out1, out2, out3 = model.forward(x, init_polys1, init_polys2, init_polys3,
                                     num_polys)
    jax.block_until_ready((out1, out2, out3))

    assert out1.shape == (B, P, 2)
    assert out2.shape == (B, P, 2)
    assert out3.shape == (B, P, 2)
    assert bool(jnp.all(jnp.isfinite(out1)))
    assert bool(jnp.all((out1 >= 0.0) & (out1 <= 1.0)))
    print("KERNEL_OK")
</pallas_src>

<mosaic_0001>
module attributes {stable_mosaic.version = 11 : i64} {
  func.func @polygnn_kernel(%arg0: memref<6x96xf32, #tpu.memory_space<vmem>>, %arg1: memref<2x96xf32, #tpu.memory_space<vmem>>, %arg2: memref<96x96xf32, #tpu.memory_space<vmem>>, %arg3: memref<32x6xf32, #tpu.memory_space<vmem>>, %arg4: memref<32x1xf32, #tpu.memory_space<vmem>>, %arg5: memref<32x64xf32, #tpu.memory_space<vmem>>, %arg6: memref<32x1xf32, #tpu.memory_space<vmem>>, %arg7: memref<32x64xf32, #tpu.memory_space<vmem>>, %arg8: memref<32x1xf32, #tpu.memory_space<vmem>>, %arg9: memref<2x32xf32, #tpu.memory_space<vmem>>, %arg10: memref<2x1xf32, #tpu.memory_space<vmem>>, %arg11: memref<2x96xf32, #tpu.memory_space<vmem>>) attributes {dimension_semantics = [], scalar_prefetch = 0 : i64, scratch_operands = 0 : i64, tpu.core_type = #tpu.core_type<tc>} {
    %c0 = arith.constant 0 : index
    %c0_0 = arith.constant 0 : index
    %0 = vector.load %arg0[%c0, %c0_0] : memref<6x96xf32, #tpu.memory_space<vmem>>, vector<6x96xf32>
    %c0_1 = arith.constant 0 : index
    %c0_2 = arith.constant 0 : index
    %1 = vector.load %arg2[%c0_1, %c0_2] : memref<96x96xf32, #tpu.memory_space<vmem>>, vector<96x96xf32>
    %c0_3 = arith.constant 0 : index
    %c0_4 = arith.constant 0 : index
    %2 = vector.load %arg3[%c0_3, %c0_4] : memref<32x6xf32, #tpu.memory_space<vmem>>, vector<32x6xf32>
    %cst = arith.constant dense<0.000000e+00> : vector<32x96xf32>
    %3 = tpu.matmul %2, %0, %cst {dimension_numbers = #tpu.dot_dimension_numbers<[1], [0], [0], [1], [0, 0, 1, 1], [], []>} : vector<32x6xf32>, vector<6x96xf32>, vector<32x96xf32> -> vector<32x96xf32>
    %c0_5 = arith.constant 0 : index
    %c0_6 = arith.constant 0 : index
    %4 = vector.load %arg4[%c0_5, %c0_6] : memref<32x1xf32, #tpu.memory_space<vmem>>, vector<32x1xf32>
    %5 = vector.broadcast %4 : vector<32x1xf32> to vector<32x96xf32>
    %6 = arith.addf %3, %5 : vector<32x96xf32>
    %cst_7 = arith.constant 0.000000e+00 : f32
    %7 = vector.broadcast %cst_7 : f32 to vector<32x96xf32>
    %8 = arith.maximumf %6, %7 : vector<32x96xf32>
    %cst_8 = arith.constant dense<0.000000e+00> : vector<32x96xf32>
    %9 = tpu.matmul %8, %1, %cst_8 {dimension_numbers = #tpu.dot_dimension_numbers<[1], [0], [0], [1], [0, 0, 1, 1], [], []>} : vector<32x96xf32>, vector<96x96xf32>, vector<32x96xf32> -> vector<32x96xf32>
    %10 = tpu.concatenate %8, %9 in 0 : vector<32x96xf32>, vector<32x96xf32> -> vector<64x96xf32>
    %c0_9 = arith.constant 0 : index
    %c0_10 = arith.constant 0 : index
    %11 = vector.load %arg5[%c0_9, %c0_10] : memref<32x64xf32, #tpu.memory_space<vmem>>, vector<32x64xf32>
    %cst_11 = arith.constant dense<0.000000e+00> : vector<32x96xf32>
    %12 = tpu.matmul %11, %10, %cst_11 {dimension_numbers = #tpu.dot_dimension_numbers<[1], [0], [0], [1], [0, 0, 1, 1], [], []>} : vector<32x64xf32>, vector<64x96xf32>, vector<32x96xf32> -> vector<32x96xf32>
    %c0_12 = arith.constant 0 : index
    %c0_13 = arith.constant 0 : index
    %13 = vector.load %arg6[%c0_12, %c0_13] : memref<32x1xf32, #tpu.memory_space<vmem>>, vector<32x1xf32>
    %14 = vector.broadcast %13 : vector<32x1xf32> to vector<32x96xf32>
    %15 = arith.addf %12, %14 : vector<32x96xf32>
    %cst_14 = arith.constant 0.000000e+00 : f32
    %16 = vector.broadcast %cst_14 : f32 to vector<32x96xf32>
    %17 = arith.maximumf %15, %16 : vector<32x96xf32>
    %cst_15 = arith.constant dense<0.000000e+00> : vector<32x96xf32>
    %18 = tpu.matmul %17, %1, %cst_15 {dimension_numbers = #tpu.dot_dimension_numbers<[1], [0], [0], [1], [0, 0, 1, 1], [], []>} : vector<32x96xf32>, vector<96x96xf32>, vector<32x96xf32> -> vector<32x96xf32>
    %19 = tpu.concatenate %17, %18 in 0 : vector<32x96xf32>, vector<32x96xf32> -> vector<64x96xf32>
    %c0_16 = arith.constant 0 : index
    %c0_17 = arith.constant 0 : index
    %20 = vector.load %arg7[%c0_16, %c0_17] : memref<32x64xf32, #tpu.memory_space<vmem>>, vector<32x64xf32>
    %cst_18 = arith.constant dense<0.000000e+00> : vector<32x96xf32>
    %21 = tpu.matmul %20, %19, %cst_18 {dimension_numbers = #tpu.dot_dimension_numbers<[1], [0], [0], [1], [0, 0, 1, 1], [], []>} : vector<32x64xf32>, vector<64x96xf32>, vector<32x96xf32> -> vector<32x96xf32>
    %c0_19 = arith.constant 0 : index
    %c0_20 = arith.constant 0 : index
    %22 = vector.load %arg8[%c0_19, %c0_20] : memref<32x1xf32, #tpu.memory_space<vmem>>, vector<32x1xf32>
    %23 = vector.broadcast %22 : vector<32x1xf32> to vector<32x96xf32>
    %24 = arith.addf %21, %23 : vector<32x96xf32>
    %cst_21 = arith.constant 0.000000e+00 : f32
    %25 = vector.broadcast %cst_21 : f32 to vector<32x96xf32>
    %26 = arith.maximumf %24, %25 : vector<32x96xf32>
    %c0_22 = arith.constant 0 : index
    %c0_23 = arith.constant 0 : index
    %27 = vector.load %arg9[%c0_22, %c0_23] : memref<2x32xf32, #tpu.memory_space<vmem>>, vector<2x32xf32>
    %cst_24 = arith.constant dense<0.000000e+00> : vector<2x96xf32>
    %28 = tpu.matmul %27, %26, %cst_24 {dimension_numbers = #tpu.dot_dimension_numbers<[1], [0], [0], [1], [0, 0, 1, 1], [], []>} : vector<2x32xf32>, vector<32x96xf32>, vector<2x96xf32> -> vector<2x96xf32>
    %c0_25 = arith.constant 0 : index
    %c0_26 = arith.constant 0 : index
    %29 = vector.load %arg10[%c0_25, %c0_26] : memref<2x1xf32, #tpu.memory_space<vmem>>, vector<2x1xf32>
    %30 = vector.broadcast %29 : vector<2x1xf32> to vector<2x96xf32>
    %31 = arith.addf %28, %30 : vector<2x96xf32>
    %c0_27 = arith.constant 0 : index
    %c0_28 = arith.constant 0 : index
    %32 = vector.load %arg1[%c0_27, %c0_28] : memref<2x96xf32, #tpu.memory_space<vmem>>, vector<2x96xf32>
    %33 = arith.addf %32, %31 : vector<2x96xf32>
    %cst_29 = arith.constant 0.000000e+00 : f32
    %cst_30 = arith.constant 1.000000e+00 : f32
    %34 = vector.broadcast %cst_29 : f32 to vector<2x96xf32>
    %35 = arith.maximumf %34, %33 : vector<2x96xf32>
    %36 = vector.broadcast %cst_30 : f32 to vector<2x96xf32>
    %37 = arith.minimumf %36, %35 : vector<2x96xf32>
    %c0_31 = arith.constant 0 : index
    %c0_32 = arith.constant 0 : index
    %38 = vector.load %arg11[%c0_31, %c0_32] : memref<2x96xf32, #tpu.memory_space<vmem>>, vector<2x96xf32>
    tpu.vector_store %arg11[%c0_31, %c0_32], %37 {strides = array<i32>} : memref<2x96xf32, #tpu.memory_space<vmem>>, vector<2x96xf32>,
    return
  }
}

</mosaic_0001>

<bundles_post_ra>
// kernel: _polygnn_forward.1
= control target key start
LH: loop header
LB: loop body
LE: loop exit
PB: predicated region body
PF: predicated region fallthrough
CT: control target
= control target key end

     0   :  { %vm92_vm0 = vcmask 1045504   ;;  %vm79_vm1 = vcmask 48128   ;;  %v1033_v3 = vmov 0   ;;  %vm185_vm2 = vcmask 785408   ;;  %s1270_s0 = inlined_call_operand.vmem [shape: f32[6,96], index: 0, kind: input, shape index: {}]   ;;  %s1271_s3 = inlined_call_operand.vmem [shape: f32[32,6], index: 3, kind: input, shape index: {}]   ;;  %s1272_s4 = inlined_call_operand.vmem [shape: f32[32,1], index: 4, kind: input, shape index: {}]   ;;  %s1273_s6 = inlined_call_operand.vmem [shape: f32[32,1], index: 6, kind: input, shape index: {}]   ;;  %s1274_s2 = inlined_call_operand.vmem [shape: f32[96,96], index: 2, kind: input, shape index: {}]   ;;  %s1275_s8 = inlined_call_operand.vmem [shape: f32[32,1], index: 8, kind: input, shape index: {}]   ;;  %s1276_s10 = inlined_call_operand.vmem [shape: f32[2,1], index: 10, kind: input, shape index: {}]   ;;  %s1277_s5 = inlined_call_operand.vmem [shape: f32[32,64], index: 5, kind: input, shape index: {}]   ;;  %s1278_s7 = inlined_call_operand.vmem [shape: f32[32,64], index: 7, kind: input, shape index: {}]   ;;  %s1279_s9 = inlined_call_operand.vmem [shape: f32[2,32], index: 9, kind: input, shape index: {}]   ;;  %s1280_s1 = inlined_call_operand.vmem [shape: f32[2,96], index: 1, kind: input, shape index: {}]   ;;  %s1281_s11 = inlined_call_operand.vmem [shape: f32[2,96], index: 11, kind: output, shape index: {}]  }
   0x1   :  { %v38_v0 = vld [vmem:[%s1270_s0] sm:$0x3f]  ;;  %v52_v2 = vld [vmem:[%s1271_s3 + $0x8] sm:$0xff]  ;;  %1031 = vset.pattern.permute.xlu0 %v1033_v3  ;;  %1032 = vset.pattern.permute.xlu1 %v1033_v3  ;;  %v53_v4 = vld [vmem:[%s1271_s3 + $0x10] sm:$0xff]  ;;  %vm311_vm3 = vcmask 523264   ;;  %vm1035_vm4 = vmmov 0  }
   0x2   :  { %v51_v1 = vld [vmem:[%s1271_s3] sm:$0xff]  ;;  %818 = vmatprep.subr.msk.mxu0 %vm92_vm0, %v38_v0  ;;  %v57_v6 = vld [vmem:[%s1272_s4 + $0x10] sm:$0xff]  ;;  %v56_v7 = vld [vmem:[%s1272_s4 + $0x8] sm:$0xff]  ;;  %vm646_vm5 = vcmask 261120   ;;  %vm724_vm6 = vcmask 779264  }
   0x3   :  { %820 = vmatprep.mubr.msk.f32.mxu0 %vm79_vm1, %v51_v1  ;;  %v55_v5 = vld [vmem:[%s1272_s4] sm:$0xff]  ;;  %819 = vmatpush3.msk.msra.mxu0 %vm92_vm0, %v38_v0  ;;  %v54_v8 = vld [vmem:[%s1271_s3 + $0x18] sm:$0xff]  ;;  %v288_v11 = vld [vmem:[%s1273_s6 + $0x8] sm:$0xff] }
   0x4   :  { %61 = vperm.xlu0 %1031, %v55_v5   ;;  %821 = vmatmul.mubr.msk.f32.vlgmr.msra.gmra.mrb[0].mxu0 %vm79_vm1, %v52_v2  ;;  %v58_v9 = vld [vmem:[%s1272_s4 + $0x18] sm:$0xff]  ;;  %v287_v10 = vld [vmem:[%s1273_s6] sm:$0xff]  ;;  %v40_v13 = vld [vmem:[%s1274_s2 + $0x8] sm:$0xff] }
   0x5   :  { %71 = vperm.xlu1 %1032, %v57_v6   ;;  %823 = vmatprep.mubr.msk.f32.mxu0 %vm79_vm1, %v53_v4  ;;  %v39_v12 = vld [vmem:[%s1274_s2] sm:$0xff]  ;;  %v289_v14 = vld [vmem:[%s1273_s6 + $0x10] sm:$0xff]  ;;  %v290_v16 = vld [vmem:[%s1273_s6 + $0x18] sm:$0xff] }
   0x6   :  { %v1143_v15 = vpack.c.bf16 %v40_v13, %v39_v12  ;;  %v41_v17 = vld [vmem:[%s1274_s2 + $0x10] sm:$0xff]  ;;  %v42_v18 = vld [vmem:[%s1274_s2 + $0x18] sm:$0xff]  ;;  %v514_v20 = vld [vmem:[%s1275_s8] sm:$0xff] }
   0x7   :  { %v1156_v19 = vpack.c.bf16 %v42_v18, %v41_v17  ;;  %v515_v21 = vld [vmem:[%s1275_s8 + $0x8] sm:$0xff]  ;;  %v43_v22 = vld [vmem:[%s1274_s2 + $0x20] sm:$0xff]  ;;  %v516_v25 = vld [vmem:[%s1275_s8 + $0x10] sm:$0xff] }
   0x8   :  { %66 = vperm.xlu0 %1031, %v56_v7   ;;  %824 = vmatmul.mubr.msk.f32.gmra.mrb[2].mxu0 %vm79_vm1, %v54_v8  ;;  %v44_v23 = vld [vmem:[%s1274_s2 + $0x28] sm:$0xff]  ;;  %v517_v26 = vld [vmem:[%s1275_s8 + $0x18] sm:$0xff]  ;;  %v45_v27 = vld [vmem:[%s1274_s2 + $0x30] sm:$0xff] }
   0x9   :  { %76 = vperm.xlu1 %1032, %v58_v9   ;;  %942 = vmatprep.subr.bf16.mxu1 %v1143_v15  ;;  %v1172_v24 = vpack.c.bf16 %v44_v23, %v43_v22  ;;  %v46_v28 = vld [vmem:[%s1274_s2 + $0x38] sm:$0xff]  ;;  %v640_v30 = vld [vmem:[%s1276_s10] sm:$0x3]  ;;  %v48_v32 = vld [vmem:[%s1274_s2 + $0x48] sm:$0xff] }
   0xa   :  { %944 = vmatpush3.bf16.msra.mxu1 %v1143_v15  ;;  %v1188_v29 = vpack.c.bf16 %v46_v28, %v45_v27  ;;  %v47_v31 = vld [vmem:[%s1274_s2 + $0x40] sm:$0xff]  ;;  %v49_v34 = vld [vmem:[%s1274_s2 + $0x50] sm:$0xff]  ;;  %v50_v35 = vld [vmem:[%s1274_s2 + $0x58] sm:$0xff] }
   0xb   :  { %946 = vmatprep.subr.bf16.mxu1 %v1156_v19  ;;  %v1201_v33 = vpack.c.bf16 %v48_v32, %v47_v31  ;;  %v961_v36 = vpack.c.bf16 %v50_v35, %v49_v34  ;;  %v283_v55 = vld [vmem:[%s1277_s5] sm:$0xff]  ;;  %v284_v62 = vld [vmem:[%s1277_s5 + $0x8] sm:$0xff]  ;;  %v285_v63 = vld [vmem:[%s1277_s5 + $0x10] sm:$0xff] }
   0xc   :  { %293 = vperm.xlu0 %1031, %v287_v10   ;;  %872 = vmatprep.mubr.msk.f32.mxu0 %vm311_vm3, %v283_v55  ;;  %v286_v0 = vld [vmem:[%s1277_s5 + $0x18] sm:$0xff]  ;;  %v512_v27 = vld [vmem:[%s1278_s7 + $0x10] sm:$0xff] }
   0xd   :  { %298 = vperm.xlu1 %1032, %v288_v11   ;;  %v513_v28 = vld [vmem:[%s1278_s7 + $0x18] sm:$0xff] }
   0xe   :  { %948 = vmatpush3.bf16.msra.mxu1 %v1156_v19 }
   0xf   :  { %950 = vmatprep.subr.bf16.mxu1 %v1172_v24 }
  0x10   :  { %303 = vperm.xlu0 %1031, %v289_v14  }
  0x11   :  { %308 = vperm.xlu1 %1032, %v290_v16  }
  0x12   :  { %952 = vmatpush3.bf16.msra.mxu1 %v1172_v24 }
  0x13   :  { %954 = vmatprep.subr.bf16.mxu1 %v1188_v29 }
  0x14   :  { %520 = vperm.xlu0 %1031, %v514_v20  }
  0x15   :  { %525 = vperm.xlu1 %1032, %v515_v21  }
  0x16   :  { %956 = vmatpush3.bf16.msra.mxu1 %v1188_v29 }
  0x17   :  { %958 = vmatprep.subr.bf16.mxu1 %v1201_v33 }
  0x18   :  { %530 = vperm.xlu0 %1031, %v516_v25  }
  0x19   :  { %535 = vperm.xlu1 %1032, %v517_v26   ;;  %v511_v26 = vld [vmem:[%s1278_s7 + $0x8] sm:$0xff] }
  0x1a   :  { %960 = vmatpush3.bf16.msra.mxu1 %v1201_v33 }
  0x1b   :  { %962 = vmatprep.subr.bf16.mxu1 %v961_v36 }
  0x1c   :  { %643 = vperm.xlu0 %1031, %v640_v30   ;;  %v1036_v30 = vmov 0.0  }
  0x1e   :  { %964 = vmatpush3.bf16.msra.mxu1 %v961_v36 }
  0x83   :  { %v62_v37 = vpop.permute.xlu0 %61 }
  0x84   :  { %v72_v38 = vpop.permute.xlu1 %71 }
  0x87   :  { %v67_v39 = vpop.permute.xlu0 %66 }
  0x88   :  { %v77_v45 = vpop.permute.xlu1 %76 }
  0x8b   :  { %v294_v2 = vpop.permute.xlu0 %293 }
  0x8c   :  { %v299_v1 = vpop.permute.xlu1 %298 }
  0x8f   :  { %v304_v11 = vpop.permute.xlu0 %303 }
  0x90   :  { %v309_v8 = vpop.permute.xlu1 %308 }
  0x93   :  { %v521_v32 = vpop.permute.xlu0 %520 }
  0x94   :  { %v526_v31 = vpop.permute.xlu1 %525 }
  0xd7   :  { %v822_v40 = vpop.f32.mrb[0].mxu0 }
  0xd8   :  { %v168_v41 = vadd.f32 %v822_v40, %v67_v39  ;;  %v162_v42 = vpop.f32.mrb[1].mxu0 }
  0xd9   :  { %v163_v43 = vadd.f32 %v162_v42, %v62_v37 }
  0xda   :  { %v182_v44 = vmax.f32 %v168_v41, 0.0  ;;  %v531_v41 = vpop.permute.xlu0 %530 }
  0xdb   :  { %v181_v46 = vmax.f32 %v163_v43, 0.0  ;;  %v825_v47 = vpop.f32.mrb[2].mxu0 }
  0xdc   :  { %v178_v48 = vadd.f32 %v825_v47, %v77_v45  ;;  %v172_v49 = vpop.f32.mrb[3].mxu0 }
  0xdd   :  { %v965_v50 = vpack.c.bf16 %v182_v44, %v181_v46  ;;  %v173_v51 = vadd.f32 %v172_v49, %v72_v38  ;;  %850 = vmatprep.mubr.msk.f32.mxu1 %vm185_vm2, %v181_v46  ;;  %v536_v38 = vpop.permute.xlu1 %535  ;;  %v639_v49 = vld [vmem:[%s1279_s9] sm:$0x3] }
  0xde   :  { %v184_v52 = vmax.f32 %v178_v48, 0.0  ;;  %851 = vmatmul.mubr.msk.f32.vlgmr.msra.gmra.mrb[0].mxu1 %vm185_vm2, %v182_v44 }
  0xdf   :  { %v183_v53 = vmax.f32 %v173_v51, 0.0  ;;  %966 = vmatprep.subr.bf16.mxu0 %v965_v50 }
  0xe0   :  { %968 = vmatpush3.bf16.msra.mxu0 %v965_v50  ;;  %v644_v50 = vpop.permute.xlu0 %643 }
  0xe1   :  { %v969_v54 = vpack.c.bf16 %v184_v52, %v183_v53  ;;  %853 = vmatprep.mubr.msk.f32.mxu1 %vm185_vm2, %v183_v53 }
  0xe2   :  { %854 = vmatmul.mubr.msk.f32.gmra.mrb[2].mxu1 %vm185_vm2, %v184_v52  ;;  %v720_v52 = vld [vmem:[%s1280_s1] sm:$0x3] }
  0xe3   :  { %970 = vmatprep.subr.bf16.mxu0 %v969_v54 }
  0xe4   :  { %972 = vmatpush3.bf16.msra.mxu0 %v969_v54 }
 0x1b1   :  { %v852_v56 = vpop.f32.mrb[0].mxu1 }
 0x1b2   :  { %v264_v57 = vpop.f32.mrb[1].mxu1 }
 0x1b3   :  { %v973_v58 = vpack.c.bf16 %v852_v56, %v264_v57 }
 0x1b5   :  { %v855_v59 = vpop.f32.mrb[2].mxu1  ;;  %974 = vmatprep.subr.bf16.mxu0 %v973_v58 }
 0x1b6   :  { %v274_v60 = vpop.f32.mrb[3].mxu1  ;;  %976 = vmatpush3.bf16.msra.mxu0 %v973_v58 }
 0x1b7   :  { %v977_v61 = vpack.c.bf16 %v855_v59, %v274_v60 }
 0x1b9   :  { %978 = vmatprep.subr.bf16.mxu0 %v977_v61 }
 0x1ba   :  { %980 = vmatpush3.bf16.msra.mxu0 %v977_v61 }
 0x1bb   :  { %982 = vmatprep.subr.bf16.mxu0 %v1143_v15 }
 0x1bd   :  { %873 = vmatmul.mubr.msk.f32.vlgmr.msra.gmra.mrb[4].mxu0 %vm311_vm3, %v284_v62 }
 0x1be   :  { %875 = vmatprep.mubr.msk.f32.mxu0 %vm311_vm3, %v285_v63  ;;  %984 = vmatpush3.bf16.msra.mxu0 %v1143_v15 }
 0x1bf   :  { %986 = vmatprep.subr.bf16.mxu0 %v1156_v19 }
 0x1c1   :  { %876 = vmatmul.mubr.msk.f32.gmra.mrb[6].mxu0 %vm311_vm3, %v286_v0 }
 0x1c2   :  { %988 = vmatpush3.bf16.msra.mxu0 %v1156_v19  ;;  %v510_v19 = vld [vmem:[%s1278_s7] sm:$0xff] }
 0x1c3   :  { %990 = vmatprep.subr.bf16.mxu0 %v1172_v24  ;;  %924 = vmatprep.mubr.msk.f32.mxu1 %vm311_vm3, %v510_v19 }
 0x1c6   :  { %992 = vmatpush3.bf16.msra.mxu0 %v1172_v24 }
 0x1c7   :  { %994 = vmatprep.subr.bf16.mxu0 %v1188_v29 }
 0x1ca   :  { %996 = vmatpush3.bf16.msra.mxu0 %v1188_v29  ;;  %v1034_v29 = vmov 0.0|0.0  }
 0x1cb   :  { %998 = vmatprep.subr.bf16.mxu0 %v1201_v33 }
 0x1ce   :  { %1000 = vmatpush3.bf16.msra.mxu0 %v1201_v33 }
 0x1cf   :  { %1002 = vmatprep.subr.bf16.mxu0 %v961_v36 }
 0x1d2   :  { %1004 = vmatpush3.bf16.msra.mxu0 %v961_v36 }
 0x290   :  { %v874_v3 = vpop.f32.mrb[4].mxu0 }
 0x291   :  { %v396_v4 = vadd.f32 %v874_v3, %v299_v1  ;;  %v390_v5 = vpop.f32.mrb[5].mxu0 }
 0x292   :  { %v391_v6 = vadd.f32 %v390_v5, %v294_v2 }
 0x293   :  { %v410_v7 = vmax.f32 %v396_v4, 0.0 }
 0x294   :  { %v409_v9 = vmax.f32 %v391_v6, 0.0  ;;  %v877_v10 = vpop.f32.mrb[6].mxu0 }
 0x295   :  { %v406_v12 = vadd.f32 %v877_v10, %v309_v8  ;;  %v400_v13 = vpop.f32.mrb[7].mxu0 }
 0x296   :  { %v1005_v14 = vpack.c.bf16 %v410_v7, %v409_v9  ;;  %v401_v15 = vadd.f32 %v400_v13, %v304_v11  ;;  %902 = vmatprep.mubr.msk.f32.mxu0 %vm185_vm2, %v409_v9 }
 0x297   :  { %v412_v16 = vmax.f32 %v406_v12, 0.0  ;;  %903 = vmatmul.mubr.msk.f32.vlgmr.msra.gmra.mrb[8].mxu0 %vm185_vm2, %v410_v7 }
 0x298   :  { %v411_v17 = vmax.f32 %v401_v15, 0.0  ;;  %1006 = vmatprep.subr.bf16.mxu1 %v1005_v14 }
 0x299   :  { %1008 = vmatpush3.bf16.msra.mxu1 %v1005_v14 }
 0x29a   :  { %v1009_v18 = vpack.c.bf16 %v412_v16, %v411_v17  ;;  %905 = vmatprep.mubr.msk.f32.mxu0 %vm185_vm2, %v411_v17 }
 0x29b   :  { %906 = vmatmul.mubr.msk.f32.gmra.mrb[10].mxu0 %vm185_vm2, %v412_v16 }
 0x29c   :  { %1010 = vmatprep.subr.bf16.mxu1 %v1009_v18 }
 0x29d   :  { %1012 = vmatpush3.bf16.msra.mxu1 %v1009_v18 }
 0x36a   :  { %v904_v20 = vpop.f32.mrb[8].mxu0 }
 0x36b   :  { %v491_v21 = vpop.f32.mrb[9].mxu0 }
 0x36c   :  { %v1013_v22 = vpack.c.bf16 %v904_v20, %v491_v21 }
 0x36e   :  { %v907_v23 = vpop.f32.mrb[10].mxu0  ;;  %1014 = vmatprep.subr.bf16.mxu1 %v1013_v22 }
 0x36f   :  { %v501_v24 = vpop.f32.mrb[11].mxu0  ;;  %1016 = vmatpush3.bf16.msra.mxu1 %v1013_v22 }
 0x370   :  { %v1017_v25 = vpack.c.bf16 %v907_v23, %v501_v24 }
 0x372   :  { %1018 = vmatprep.subr.bf16.mxu1 %v1017_v25 }
 0x373   :  { %1020 = vmatpush3.bf16.msra.mxu1 %v1017_v25 }
 0x374   :  { %1021 = vmatprep.subr.bf16.mxu1 %v1034_v29 }
 0x376   :  { %925 = vmatmul.mubr.msk.f32.vlgmr.msra.gmra.mrb[4].mxu1 %vm311_vm3, %v511_v26 }
 0x377   :  { %927 = vmatprep.mubr.msk.f32.mxu1 %vm311_vm3, %v512_v27 }
 0x37a   :  { %928 = vmatmul.mubr.msk.f32.gmra.mrb[6].mxu1 %vm311_vm3, %v513_v28 }
 0x37b   :  { %938 = vmatprep.mubr.msk.f32.mxu1 %vm1035_vm4, %v1036_v30 }
 0x449   :  { %v926_v33 = vpop.f32.mrb[4].mxu1 }
 0x44a   :  { %v622_v34 = vadd.f32 %v926_v33, %v526_v31  ;;  %v616_v35 = vpop.f32.mrb[5].mxu1 }
 0x44b   :  { %v617_v36 = vadd.f32 %v616_v35, %v521_v32 }
 0x44c   :  { %v636_v37 = vmax.f32 %v622_v34, 0.0 }
 0x44d   :  { %v635_v39 = vmax.f32 %v617_v36, 0.0  ;;  %v929_v40 = vpop.f32.mrb[6].mxu1 }
 0x44e   :  { %v632_v42 = vadd.f32 %v929_v40, %v536_v38  ;;  %v626_v43 = vpop.f32.mrb[7].mxu1 }
 0x44f   :  { %v1022_v44 = vpack.c.bf16 %v636_v37, %v635_v39  ;;  %v627_v45 = vadd.f32 %v626_v43, %v531_v41 }
 0x450   :  { %v638_v46 = vmax.f32 %v632_v42, 0.0 }
 0x451   :  { %v637_v47 = vmax.f32 %v627_v45, 0.0  ;;  %1023 = vmatpush3.bf16.msra.mxu1 %v1022_v44 }
 0x452   :  { %1024 = vmatprep.subr.bf16.mxu1 %v1034_v29 }
 0x453   :  { %v1025_v48 = vpack.c.bf16 %v638_v46, %v637_v47 }
 0x455   :  { %1026 = vmatpush3.bf16.msra.mxu1 %v1025_v48 }
 0x458   :  { %939 = vmatmul.mubr.msk.f32.vlgmr.msra.gmra.mrb[8].mxu1 %vm646_vm5, %v639_v49 }
 0x52b   :  { %v716_v51 = vpop.f32.mrb[8].mxu1 }
 0x52c   :  { %v717_v53 = vadd.f32 %v716_v51, %v644_v50  ;;  %v940_v54 = vpop.f32.mrb[9].mxu1 }
 0x52e   :  { %v721_v55 = vadd.f32 %v720_v52, %v717_v53 }
 0x530   :  { %v722_v56 = vmax.f32 %v721_v55, 0.0 }
 0x532   :  { %v723_v57 = vmin.f32 %v722_v56, 1.0 }
 0x534   :  { %725 = vst.msk [vmem:[%s1281_s11] sm:$0x3] %vm724_vm6, %v723_v57 }

</bundles_post_ra>
